<compile_context>
chip_gen: v7x
topology: tpu7x:2x2x1
jax: 0.10.0
libtpu: 0.0.40
codegen_flags: <defaults>
</compile_context>

<pallas_src>
import functools

import numpy as np
import jax
import jax.numpy as jnp
from jax.experimental import pallas as pl
from jax.experimental.pallas import tpu as pltpu


# ----------------------------------------------------------------------------
# Deterministic "parameter" setup: Gaussian kernel (as in get_gaussian_kernel)
# ----------------------------------------------------------------------------
def get_gaussian_kernel_1d(kernel_size: int, sigma: float = 3.0) -> np.ndarray:
    ax = np.arange(kernel_size, dtype=np.float64) - (kernel_size - 1) / 2.0
    g = np.exp(-(ax ** 2) / (2.0 * sigma ** 2))
    g = g / g.sum()
    return g.astype(np.float32)


def get_gaussian_kernel(kernel_size: int, sigma: float = 3.0) -> np.ndarray:
    ax = np.arange(kernel_size, dtype=np.float64) - (kernel_size - 1) / 2.0
    xx, yy = np.meshgrid(ax, ax)
    k = np.exp(-(xx ** 2 + yy ** 2) / (2.0 * sigma ** 2))
    k = k / k.sum()
    return k.astype(np.float32)


def _banded_blur_matrix(L: int, g1d: np.ndarray) -> np.ndarray:
    """(L, L) matrix M with M[out, in] = g1d[in - out + P]; zero-pad at edges."""
    K = int(g1d.shape[0])
    P = K // 2
    m = np.zeros((L, L), dtype=np.float32)
    for out_i in range(L):
        for k in range(K):
            in_i = out_i + k - P
            if 0 <= in_i < L:
                m[out_i, in_i] = g1d[k]
    return m


# ----------------------------------------------------------------------------
# Pallas kernel: separable Gaussian blur (bf16 MXU, f32 acc) + f32 residual
# ----------------------------------------------------------------------------
def _freq_split_kernel(bh_ref, cw_ref, x_ref, out_ref, *, nb: int, C: int, tile_h: int):
    # bh_ref : (tile_h, H) bf16 vertical blur rows for this H-tile
    # cw_ref : (W, W)      bf16 horizontal blur matrix (grid-invariant)
    # x_ref  : (nb, C, H, W) f32 input images (full H; constant over tile axis)
    # out_ref: (nb, 2C, tile_h, W) channels [0:C] = low, [C:2C] = high
    H = x_ref.shape[2]
    W = x_ref.shape[3]
    bh = bh_ref[...]
    cw = cw_ref[...]

    # Vertical pass per (batch, channel) plane: (tile_h, H) @ (H, W) on the MXU.
    vs = []
    for b in range(nb):          # small static unroll (nb*C <= 24 typically)
        for c in range(C):
            xc = x_ref[b, c].astype(jnp.bfloat16)                      # (H, W)
            v = jnp.dot(bh, xc, preferred_element_type=jnp.float32)    # (tile_h, W)
            vs.append(v.astype(jnp.bfloat16))
    v2d = jnp.concatenate(vs, axis=0)                                  # (nb*C*tile_h, W)

    # Horizontal pass fused across all planes: one big MXU matmul.
    low2d = jnp.dot(v2d, cw, preferred_element_type=jnp.float32)       # f32
    low = low2d.reshape(nb, C, tile_h, W)

    # Residual (f32) over the output rows owned by this tile.
    if tile_h == H:
        x_rows = x_ref[...]
    else:
        row0 = pl.multiple_of(pl.program_id(1) * tile_h, tile_h)
        x_rows = x_ref[:, :, pl.ds(row0, tile_h), :]
    high = x_rows.astype(jnp.float32) - low

    # Coalesced stores: all low planes, then all high planes.
    out_ref[:, 0:C, :, :] = low.astype(out_ref.dtype)
    out_ref[:, C:2 * C, :, :] = high.astype(out_ref.dtype)


def _choose_tiling(N: int, C: int, H: int, W: int):
    """Pick (batch block, H tile) sized for VMEM across v5e/v6e/v7x."""
    x_bytes = N * C * H * W * 4
    if x_bytes <= (4 << 20) and N <= 8:
        # Tiny problem: one grid step for the whole batch (kill per-step overhead).
        return N, H

    def step_bytes(th):
        xb = C * H * W * 4                   # input block (full H, f32)
        ob = 2 * C * th * W * 4              # output block (f32)
        return 2 * (xb + ob + th * H * 2 + W * W * 2)   # double-buffered

    budget = 40 << 20                        # headroom under v7x's 64 MiB VMEM
    if step_bytes(H) <= budget:
        return 1, H
    cands = [d for d in range(16, H, 16) if H % d == 0]   # bf16-tile aligned divisors
    for th in sorted(cands, reverse=True):
        if step_bytes(th) <= budget:
            return 1, th
    return 1, (min(cands) if cands else H)


def find_fake_freq_pallas(x: jax.Array, kernel_size: int, sigma: float = 3.0) -> jax.Array:
    """x: (N, C, H, W) float32.  Returns (N, 2*C, H, W) = cat([low, high], dim=1)."""
    N, C, H, W = x.shape
    assert kernel_size % 2 == 1, "gauss_kernel_size must be odd (nn.Conv2d padding=K//2)"

    g1d = get_gaussian_kernel_1d(kernel_size, sigma)
    # sanity: the 2-D kernel used by the reference is exactly outer(g1d, g1d)
    assert np.allclose(np.outer(g1d, g1d), get_gaussian_kernel(kernel_size, sigma), atol=1e-7)

    # bf16 blur matrices: MXU-native operands, half the VMEM footprint.
    bh_full = jnp.asarray(_banded_blur_matrix(H, g1d), dtype=jnp.bfloat16)    # (H, H) rows=out rows
    cw = jnp.asarray(_banded_blur_matrix(W, g1d).T, dtype=jnp.bfloat16)       # (W, W) cols=out cols

    nb, tile_h = _choose_tiling(N, C, H, W)
    assert N % nb == 0 and H % tile_h == 0
    grid = (N // nb, H // tile_h)

    kernel = functools.partial(_freq_split_kernel, nb=nb, C=C, tile_h=tile_h)

    # VMEM limit sized from the actual blocks (double-buffering + temporaries).
    block_bytes = (nb * C * H * W * 4 + nb * 2 * C * tile_h * W * 4
                   + tile_h * H * 2 + W * W * 2)
    vmem_limit = int(min(64 << 20, max(16 << 20, 4 * block_bytes)))

    cost = pl.CostEstimate(
        flops=2 * N * C * H * W * (H + W),
        transcendentals=0,
        bytes_accessed=12 * N * C * H * W + 2 * (H * H + W * W),
    )

    out = pl.pallas_call(
        kernel,
        out_shape=jax.ShapeDtypeStruct((N, 2 * C, H, W), x.dtype),
        grid=grid,
        in_specs=[
            pl.BlockSpec((tile_h, H), lambda n, i: (i, 0)),            # bh rows for this tile
            pl.BlockSpec((W, W), lambda n, i: (0, 0)),                 # cw: fetched once
            pl.BlockSpec((nb, C, H, W), lambda n, i: (n, 0, 0, 0)),    # x: constant over H-tile axis
        ],
        out_specs=pl.BlockSpec((nb, 2 * C, tile_h, W), lambda n, i: (n, 0, i, 0)),
        compiler_params=pltpu.CompilerParams(
            dimension_semantics=("parallel", "parallel"),
            vmem_limit_bytes=vmem_limit,
        ),
        cost_estimate=cost,
    )(bh_full, cw, x)
    return out


# ----------------------------------------------------------------------------
# Plain-JAX glue reproducing the rest of the implementable forward-pass math
# ----------------------------------------------------------------------------
def decide_circle(r: int, N: int, C: int, L: int):
    # mask_h: 1 everywhere, 0 inside a centered circle of radius r (high-pass mask)
    # TODO(synk): reference decide_circle may center at L/2 without the 0.5 offset
    # and is square (L = load_size); verify against the original repo.
    ii = jnp.arange(L, dtype=jnp.float32)[:, None] - L / 2.0 + 0.5
    jj = jnp.arange(L, dtype=jnp.float32)[None, :] - L / 2.0 + 0.5
    inside = (ii ** 2 + jj ** 2) < float(r) ** 2
    plane = jnp.where(inside, 0.0, 1.0).astype(jnp.float32)
    mask_h = jnp.broadcast_to(plane, (N, C, L, L))
    mask_l = 1.0 - mask_h
    return mask_h, mask_l


def occay_forward(real_A: jax.Array, real_B: jax.Array,
                  gauss_kernel_size: int = 5, radius: int = 4,
                  output_nc: int = 3):
    """Implementable part of OCCAY.forward.
    # TODO(synk): netE / netG / netD / netPD / VGG perceptual loss are external,
    # undefined sub-networks and are not translated.
    """
    real_B_pix_freq = find_fake_freq_pallas(real_B, gauss_kernel_size)

    if output_nc == 3:
        real_B_low = real_B_pix_freq[:, :3, ...]
        real_B_high = real_B_pix_freq[:, 3:6, ...]
    else:
        real_B_low = real_B_pix_freq[:, 0, ...][:, None]
        real_B_high = real_B_pix_freq[:, 1, ...][:, None]

    N, C, H, W = real_A.shape
    mask_h, _ = decide_circle(r=radius, N=N, C=C, L=H)
    mask_1 = jnp.ones(real_A.shape, dtype=real_A.dtype)

    return {
        "real_B_pix_freq": real_B_pix_freq,
        "real_B_low": real_B_low,
        "real_B_high": real_B_high,
        "mask_h": mask_h,
        "mask_1": mask_1,
    }


# ----------------------------------------------------------------------------
# Reference (host-side numpy) depthwise blur for correctness checking
# ----------------------------------------------------------------------------
def _ref_blur_np(x: np.ndarray, k2d: np.ndarray) -> np.ndarray:
    N, C, H, W = x.shape
    K = k2d.shape[0]
    P = K // 2
    xp = np.pad(x, ((0, 0), (0, 0), (P, P), (P, P)))
    out = np.zeros_like(x, dtype=np.float64)
    for ki in range(K):
        for kj in range(K):
            out += k2d[ki, kj] * xp[:, :, ki:ki + H, kj:kj + W]
    return out.astype(np.float32)


if __name__ == "__main__":
    key = jax.random.PRNGKey(0)
    kA, kB = jax.random.split(key)
    N, C, H, W = 2, 3, 16, 16  # output_nc == 3 branch
    real_A = jax.random.uniform(kA, (N, C, H, W), dtype=jnp.float32)
    real_B = jax.random.uniform(kB, (N, C, H, W), dtype=jnp.float32)

    out = occay_forward(real_A, real_B, gauss_kernel_size=5, radius=4, output_nc=3)
    jax.block_until_ready(out)

    # sanity 1: low + high must reconstruct real_B exactly (high = x - low in f32)
    recon = out["real_B_low"] + out["real_B_high"]
    assert jnp.allclose(recon, real_B, atol=1e-6), "low+high != real_B"

    # sanity 2: low ~= depthwise zero-padded Gaussian blur (bf16 MXU -> ~1e-3 tol)
    ref_low = _ref_blur_np(np.asarray(real_B), get_gaussian_kernel(5))
    assert np.allclose(np.asarray(out["real_B_low"]), ref_low, atol=2e-2), "low != gauss blur"

    assert out["real_B_pix_freq"].shape == (N, 2 * C, H, W)
    assert out["mask_h"].shape == (N, C, H, W)
    assert out["mask_1"].shape == (N, C, H, W)

    print("KERNEL_OK")
</pallas_src>

<mosaic_0001>
module attributes {stable_mosaic.version = 11 : i64} {
  func.func @_freq_split_kernel(%arg0: i32, %arg1: i32, %arg2: memref<16x16xbf16, #tpu.memory_space<vmem>>, %arg3: memref<16x16xbf16, #tpu.memory_space<vmem>>, %arg4: memref<2x3x16x16xf32, #tpu.memory_space<vmem>>, %arg5: memref<2x6x16x16xf32, #tpu.memory_space<vmem>>) attributes {dimension_semantics = [#tpu.dimension_semantics<parallel>, #tpu.dimension_semantics<parallel>], iteration_bounds = array<i64: 1, 1>, scalar_prefetch = 0 : i64, scratch_operands = 0 : i64, tpu.core_type = #tpu.core_type<tc>, window_params = [{transform_indices = @transform_0, window_bounds = array<i64: 16, 16>}, {pipeline_mode = #tpu.pipeline_mode<synchronous>, transform_indices = @transform_1, window_bounds = array<i64: 16, 16>}, {transform_indices = @transform_2, window_bounds = array<i64: 2, 3, 16, 16>}, {transform_indices = @transform_3, window_bounds = array<i64: 2, 6, 16, 16>}]} {
    %c0 = arith.constant 0 : index
    %c0_0 = arith.constant 0 : index
    %0 = vector.load %arg2[%c0, %c0_0] : memref<16x16xbf16, #tpu.memory_space<vmem>>, vector<16x16xbf16>
    %c0_1 = arith.constant 0 : index
    %c0_2 = arith.constant 0 : index
    %1 = vector.load %arg3[%c0_1, %c0_2] : memref<16x16xbf16, #tpu.memory_space<vmem>>, vector<16x16xbf16>
    %c0_3 = arith.constant 0 : index
    %c0_4 = arith.constant 0 : index
    %c0_5 = arith.constant 0 : index
    %c0_6 = arith.constant 0 : index
    %2 = vector.load %arg4[%c0_3, %c0_4, %c0_5, %c0_6] : memref<2x3x16x16xf32, #tpu.memory_space<vmem>>, vector<1x1x16x16xf32>
    %3 = vector.shape_cast %2 : vector<1x1x16x16xf32> to vector<16x16xf32>
    %4 = arith.truncf %3 : vector<16x16xf32> to vector<16x16xbf16>
    %cst = arith.constant dense<0.000000e+00> : vector<16x16xf32>
    %5 = tpu.matmul %0, %4, %cst {dimension_numbers = #tpu.dot_dimension_numbers<[1], [0], [0], [1], [0, 0, 1, 1], [], []>} : vector<16x16xbf16>, vector<16x16xbf16>, vector<16x16xf32> -> vector<16x16xf32>
    %6 = arith.truncf %5 : vector<16x16xf32> to vector<16x16xbf16>
    %c0_7 = arith.constant 0 : index
    %c1 = arith.constant 1 : index
    %c0_8 = arith.constant 0 : index
    %c0_9 = arith.constant 0 : index
    %7 = vector.load %arg4[%c0_7, %c1, %c0_8, %c0_9] : memref<2x3x16x16xf32, #tpu.memory_space<vmem>>, vector<1x1x16x16xf32>
    %8 = vector.shape_cast %7 : vector<1x1x16x16xf32> to vector<16x16xf32>
    %9 = arith.truncf %8 : vector<16x16xf32> to vector<16x16xbf16>
    %cst_10 = arith.constant dense<0.000000e+00> : vector<16x16xf32>
    %10 = tpu.matmul %0, %9, %cst_10 {dimension_numbers = #tpu.dot_dimension_numbers<[1], [0], [0], [1], [0, 0, 1, 1], [], []>} : vector<16x16xbf16>, vector<16x16xbf16>, vector<16x16xf32> -> vector<16x16xf32>
    %11 = arith.truncf %10 : vector<16x16xf32> to vector<16x16xbf16>
    %c0_11 = arith.constant 0 : index
    %c2 = arith.constant 2 : index
    %c0_12 = arith.constant 0 : index
    %c0_13 = arith.constant 0 : index
    %12 = vector.load %arg4[%c0_11, %c2, %c0_12, %c0_13] : memref<2x3x16x16xf32, #tpu.memory_space<vmem>>, vector<1x1x16x16xf32>
    %13 = vector.shape_cast %12 : vector<1x1x16x16xf32> to vector<16x16xf32>
    %14 = arith.truncf %13 : vector<16x16xf32> to vector<16x16xbf16>
    %cst_14 = arith.constant dense<0.000000e+00> : vector<16x16xf32>
    %15 = tpu.matmul %0, %14, %cst_14 {dimension_numbers = #tpu.dot_dimension_numbers<[1], [0], [0], [1], [0, 0, 1, 1], [], []>} : vector<16x16xbf16>, vector<16x16xbf16>, vector<16x16xf32> -> vector<16x16xf32>
    %16 = arith.truncf %15 : vector<16x16xf32> to vector<16x16xbf16>
    %c1_15 = arith.constant 1 : index
    %c0_16 = arith.constant 0 : index
    %c0_17 = arith.constant 0 : index
    %c0_18 = arith.constant 0 : index
    %17 = vector.load %arg4[%c1_15, %c0_16, %c0_17, %c0_18] : memref<2x3x16x16xf32, #tpu.memory_space<vmem>>, vector<1x1x16x16xf32>
    %18 = vector.shape_cast %17 : vector<1x1x16x16xf32> to vector<16x16xf32>
    %19 = arith.truncf %18 : vector<16x16xf32> to vector<16x16xbf16>
    %cst_19 = arith.constant dense<0.000000e+00> : vector<16x16xf32>
    %20 = tpu.matmul %0, %19, %cst_19 {dimension_numbers = #tpu.dot_dimension_numbers<[1], [0], [0], [1], [0, 0, 1, 1], [], []>} : vector<16x16xbf16>, vector<16x16xbf16>, vector<16x16xf32> -> vector<16x16xf32>
    %21 = arith.truncf %20 : vector<16x16xf32> to vector<16x16xbf16>
    %c1_20 = arith.constant 1 : index
    %c1_21 = arith.constant 1 : index
    %c0_22 = arith.constant 0 : index
    %c0_23 = arith.constant 0 : index
    %22 = vector.load %arg4[%c1_20, %c1_21, %c0_22, %c0_23] : memref<2x3x16x16xf32, #tpu.memory_space<vmem>>, vector<1x1x16x16xf32>
    %23 = vector.shape_cast %22 : vector<1x1x16x16xf32> to vector<16x16xf32>
    %24 = arith.truncf %23 : vector<16x16xf32> to vector<16x16xbf16>
    %cst_24 = arith.constant dense<0.000000e+00> : vector<16x16xf32>
    %25 = tpu.matmul %0, %24, %cst_24 {dimension_numbers = #tpu.dot_dimension_numbers<[1], [0], [0], [1], [0, 0, 1, 1], [], []>} : vector<16x16xbf16>, vector<16x16xbf16>, vector<16x16xf32> -> vector<16x16xf32>
    %26 = arith.truncf %25 : vector<16x16xf32> to vector<16x16xbf16>
    %c1_25 = arith.constant 1 : index
    %c2_26 = arith.constant 2 : index
    %c0_27 = arith.constant 0 : index
    %c0_28 = arith.constant 0 : index
    %27 = vector.load %arg4[%c1_25, %c2_26, %c0_27, %c0_28] : memref<2x3x16x16xf32, #tpu.memory_space<vmem>>, vector<1x1x16x16xf32>
    %28 = vector.shape_cast %27 : vector<1x1x16x16xf32> to vector<16x16xf32>
    %29 = arith.truncf %28 : vector<16x16xf32> to vector<16x16xbf16>
    %cst_29 = arith.constant dense<0.000000e+00> : vector<16x16xf32>
    %30 = tpu.matmul %0, %29, %cst_29 {dimension_numbers = #tpu.dot_dimension_numbers<[1], [0], [0], [1], [0, 0, 1, 1], [], []>} : vector<16x16xbf16>, vector<16x16xbf16>, vector<16x16xf32> -> vector<16x16xf32>
    %31 = arith.truncf %30 : vector<16x16xf32> to vector<16x16xbf16>
    %32 = tpu.concatenate %6, %11, %16, %21, %26, %31 in 0 : vector<16x16xbf16>, vector<16x16xbf16>, vector<16x16xbf16>, vector<16x16xbf16>, vector<16x16xbf16>, vector<16x16xbf16> -> vector<96x16xbf16>
    %cst_30 = arith.constant dense<0.000000e+00> : vector<96x16xf32>
    %33 = tpu.matmul %32, %1, %cst_30 {dimension_numbers = #tpu.dot_dimension_numbers<[1], [0], [0], [1], [0, 0, 1, 1], [], []>} : vector<96x16xbf16>, vector<16x16xbf16>, vector<96x16xf32> -> vector<96x16xf32>
    %34 = vector.shape_cast %33 : vector<96x16xf32> to vector<2x3x16x16xf32>
    %c0_31 = arith.constant 0 : index
    %c0_32 = arith.constant 0 : index
    %c0_33 = arith.constant 0 : index
    %c0_34 = arith.constant 0 : index
    %35 = vector.load %arg4[%c0_31, %c0_32, %c0_33, %c0_34] : memref<2x3x16x16xf32, #tpu.memory_space<vmem>>, vector<2x3x16x16xf32>
    %36 = arith.subf %35, %34 : vector<2x3x16x16xf32>
    %c0_35 = arith.constant 0 : index
    %c0_36 = arith.constant 0 : index
    %c0_37 = arith.constant 0 : index
    %c0_38 = arith.constant 0 : index
    %37 = vector.load %arg5[%c0_35, %c0_36, %c0_37, %c0_38] : memref<2x6x16x16xf32, #tpu.memory_space<vmem>>, vector<2x3x16x16xf32>
    tpu.vector_store %arg5[%c0_35, %c0_36, %c0_37, %c0_38], %34 {strides = array<i32>} : memref<2x6x16x16xf32, #tpu.memory_space<vmem>>, vector<2x3x16x16xf32>,
    %c0_39 = arith.constant 0 : index
    %c3 = arith.constant 3 : index
    %c0_40 = arith.constant 0 : index
    %c0_41 = arith.constant 0 : index
    %38 = vector.load %arg5[%c0_39, %c3, %c0_40, %c0_41] : memref<2x6x16x16xf32, #tpu.memory_space<vmem>>, vector<2x3x16x16xf32>
    tpu.vector_store %arg5[%c0_39, %c3, %c0_40, %c0_41], %36 {strides = array<i32>} : memref<2x6x16x16xf32, #tpu.memory_space<vmem>>, vector<2x3x16x16xf32>,
    return
  }
  func.func @transform_0(%arg0: i32, %arg1: i32) -> (i32, i32) {
    %c0_i32 = arith.constant 0 : i32
    %c0_i32_0 = arith.constant 0 : i32
    return %arg1, %c0_i32 : i32, i32
  }
  func.func @transform_1(%arg0: i32, %arg1: i32) -> (i32, i32) {
    %c0_i32 = arith.constant 0 : i32
    %c0_i32_0 = arith.constant 0 : i32
    %c0_i32_1 = arith.constant 0 : i32
    return %c0_i32, %c0_i32_0 : i32, i32
  }
  func.func @transform_2(%arg0: i32, %arg1: i32) -> (i32, i32, i32, i32) {
    %c0_i32 = arith.constant 0 : i32
    %c0_i32_0 = arith.constant 0 : i32
    %c0_i32_1 = arith.constant 0 : i32
    %c0_i32_2 = arith.constant 0 : i32
    return %arg0, %c0_i32, %c0_i32_0, %c0_i32_1 : i32, i32, i32, i32
  }
  func.func @transform_3(%arg0: i32, %arg1: i32) -> (i32, i32, i32, i32) {
    %c0_i32 = arith.constant 0 : i32
    %c0_i32_0 = arith.constant 0 : i32
    %c0_i32_1 = arith.constant 0 : i32
    return %arg0, %c0_i32, %arg1, %c0_i32_0 : i32, i32, i32, i32
  }
}

</mosaic_0001>

<bundles_post_ra>
// kernel: tpu_custom_call.1
= control target key start
LH: loop header
LB: loop body
LE: loop exit
PB: predicated region body
PF: predicated region fallthrough
CT: control target
= control target key end

     0   :  { %8 = vsyncpa [#allocation3], 0  ;;  %s887_s0 = inlined_call_operand.hbm [shape: bf16[16,16], index: 0, kind: input, shape index: {}]   ;;  %s888_s1 = inlined_call_operand.hbm [shape: bf16[16,16], index: 1, kind: input, shape index: {}]   ;;  %s889_s2 = inlined_call_operand.hbm [shape: f32[2,3,16,16], index: 2, kind: input, shape index: {}]   ;;  %s890_s3 = inlined_call_operand.hbm [shape: f32[2,6,16,16], index: 3, kind: output, shape index: {}]  }
   0x1   :  { %9 = vsyncpa [#allocation6], 0 }
   0x2   :  { %10 = vsyncpa [#allocation4], 0  ;;  %s706_s12 = smov [#allocation5]   ;;  %s707_s14 = smov [#allocation2]  }
   0x3   :  { %s28_s13 = sshll.u32 %s706_s12, 4  ;;  %s16_s15 = sshll.u32 %s707_s14, 4  ;;  %s29_s13 = int_to_ptr.vmem [resolvable:$true] %s28_s13  ;;  %s736_s15 = int_to_ptr.vmem [resolvable:$true] %s16_s15 }
   0x4   :  { %s612_s18 = scalar_lea.hbm %s888_s1, 128 }
   0x5   :  { %p613_p0 = scmp.ne.s32.totalorder %s888_s1, %s612_s18  ;;  %p616_p1 = scmp.lt.u32.totalorder %s612_s18, %s888_s1 }
   0x7   :  { %p618_p2 = pnand %p616_p1, %p613_p0 }
   0x9   :  { %621 = shalt.err (!%p618_p2)
}
   0xa   :  { %s622_s23 = scalar_lea.vmem %s29_s13, 128  ;;  %p627_p4 = scmp.lt.s32.totalorder %s29_s13, %s29_s13 }
   0xb   :  { %p623_p3 = scmp.ne.s32.totalorder %s29_s13, %s622_s23  ;;  %p628_p5 = scmp.lt.s32.totalorder %s622_s23, %s622_s23 }
   0xd   :  { %p629_p6 = por %p628_p5, %p627_p4 }
   0xf   :  { %p630_p7 = pnand %p629_p6, %p623_p3 }
  0x11   :  { %633 = shalt.err (!%p630_p7)
}
  0x12   :  { %s708_s24 = smov 64   ;;  %s709_s25 = smov 4  }
  0x13   :  { %34 = dma.hbm_to_vmem [thread:$0]  %s888_s1, 128, %s29_s13, [#allocation6], %s708_s24, %s708_s24, %s709_s25  }
  0x14   :  { %s634_s30 = scalar_lea.hbm %s887_s0, 128 }
  0x15   :  { %p635_p8 = scmp.ne.s32.totalorder %s887_s0, %s634_s30  ;;  %p638_p9 = scmp.lt.u32.totalorder %s634_s30, %s887_s0 }
  0x17   :  { %p640_p10 = pnand %p638_p9, %p635_p8 }
  0x19   :  { %643 = shalt.err (!%p640_p10)
}
  0x1a   :  { %s644_s8 = scalar_lea.vmem %s736_s15, 128  ;;  %p649_p12 = scmp.lt.s32.totalorder %s736_s15, %s736_s15 }
  0x1b   :  { %p645_p11 = scmp.ne.s32.totalorder %s736_s15, %s644_s8  ;;  %p650_p13 = scmp.lt.s32.totalorder %s644_s8, %s644_s8 }
  0x1d   :  { %p651_p0 = por %p650_p13, %p649_p12 }
  0x1f   :  { %p652_p1 = pnand %p651_p0, %p645_p11 }
  0x21   :  { %655 = shalt.err (!%p652_p1)
}
  0x22   :  { %22 = dma.hbm_to_vmem [thread:$0]  %s887_s0, 128, %s736_s15, [#allocation3], %s708_s24, %s708_s24, %s709_s25  }
  0x23   :  { %s710_s10 = smov [#allocation7]   ;;  %s656_s14 = scalar_lea.hbm %s889_s2, 1536 }
  0x24   :  { %s40_s11 = sshll.u32 %s710_s10, 4  ;;  %p657_p2 = scmp.ne.s32.totalorder %s889_s2, %s656_s14  ;;  %s41_s11 = int_to_ptr.vmem [resolvable:$true] %s40_s11 }
  0x25   :  { %p660_p3 = scmp.lt.u32.totalorder %s656_s14, %s889_s2 }
  0x27   :  { %p662_p4 = pnand %p660_p3, %p657_p2 }
  0x29   :  { %665 = shalt.err (!%p662_p4)
}
  0x2a   :  { %s666_s20 = scalar_lea.vmem %s41_s11, 1536  ;;  %p671_p6 = scmp.lt.s32.totalorder %s41_s11, %s41_s11 }
  0x2b   :  { %p667_p5 = scmp.ne.s32.totalorder %s41_s11, %s666_s20  ;;  %p672_p7 = scmp.lt.s32.totalorder %s666_s20, %s666_s20 }
  0x2d   :  { %p673_p8 = por %p672_p7, %p671_p6 }
  0x2f   :  { %p674_p9 = pnand %p673_p8, %p667_p5 }
  0x31   :  { %677 = shalt.err (!%p674_p9)
}
  0x32   :  { %s711_s0 = smov 128   ;;  %s712_s15 = smov 8  }
  0x33   :  { %46 = dma.hbm_to_vmem [thread:$0]  %s889_s2, 1536, %s41_s11, [#allocation6], %s711_s0, %s711_s0, %s712_s15  }
  0x34   :  { %700 = dma.done.wait [#allocation3], 128  }
  0x35   :  { %701 = vsyncadd [#allocation3], 4294967168 }
  0x36   :  { %702 = dma.done.wait [#allocation6], 1664  }
  0x37   :  { %703 = vsyncadd [#allocation6], 4294965632  ;;  %v713_v0 = vmov 0.0   ;;  %vm714_vm0 = vmmov 0   ;;  %v784_v1 = vld [vmem:[#allocation7] sm:$0xff]  ;;  %v786_v2 = vld [vmem:[#allocation7 + $0x8] sm:$0xff] }
  0x38   :  { %550 = vmatprep.subr.bf16.mxu1 %v713_v0  ;;  %552 = vmatprep.mubr.msk.bf16.mxu1 %vm714_vm0, %v713_v0  ;;  %v63_v3 = vpack.c.bf16 %v786_v2, %v784_v1  ;;  %v790_v4 = vld [vmem:[#allocation7 + $0x10] sm:$0xff]  ;;  %v792_v6 = vld [vmem:[#allocation7 + $0x18] sm:$0xff]  ;;  %vm69_vm1 = vcmask 130048   ;;  %v796_v8 = vld [vmem:[#allocation7 + $0x20] sm:$0xff]  ;;  %s715_s2 = smov [#allocation8]  }
  0x39   :  { %562 = vmatprep.subr.bf16.mxu0 %v713_v0  ;;  %564 = vmatprep.mubr.msk.bf16.mxu0 %vm714_vm0, %v713_v0  ;;  %v610_v5 = vld [vmem:[#allocation2] sm:$0xff]   ;;  %v118_v7 = vpack.c.bf16 %v792_v6, %v790_v4  ;;  %v798_v9 = vld [vmem:[#allocation7 + $0x28] sm:$0xff]  ;;  %v800_v10 = vld [vmem:[#allocation7 + $0x40] sm:$0xff]  ;;  %s504_s23 = sshll.u32 %s715_s2, 4  ;;  %s505_s23 = int_to_ptr.vmem [resolvable:$true] %s504_s23 }
  0x3a   :  { %551 = vmatpush3.bf16.msra.mxu1 %v63_v3  ;;  %v164_v11 = vpack.c.bf16 %v798_v9, %v796_v8  ;;  %v804_v12 = vld [vmem:[#allocation7 + $0x48] sm:$0xff]  ;;  %v810_v14 = vld [vmem:[#allocation7 + $0x30] sm:$0xff]  ;;  %v812_v15 = vld [vmem:[#allocation7 + $0x38] sm:$0xff]  ;;  %s678_s24 = scalar_lea.vmem %s505_s23, 3072  ;;  %p683_p11 = scmp.lt.s32.totalorder %s505_s23, %s505_s23 }
  0x3b   :  { %556 = vmatprep.subr.bf16.mxu1 %v713_v0  ;;  %v256_v13 = vpack.c.bf16 %v804_v12, %v800_v10  ;;  %v210_v16 = vpack.c.bf16 %v812_v15, %v810_v14  ;;  %v820_v17 = vld [vmem:[#allocation7 + $0x50] sm:$0xff]  ;;  %v822_v18 = vld [vmem:[#allocation7 + $0x58] sm:$0xff]  ;;  %p679_p10 = scmp.ne.s32.totalorder %s505_s23, %s678_s24  ;;  %p684_p12 = scmp.lt.s32.totalorder %s678_s24, %s678_s24 }
  0x3c   :  { %563 = vmatpush3.bf16.msra.mxu0 %v164_v11  ;;  %v302_v19 = vpack.c.bf16 %v822_v18, %v820_v17  ;;  %v611_v20 = vld [vmem:[#allocation5] sm:$0xff]  }
  0x3d   :  { %553 = vmatmul.mubr.msk.bf16.vlgmr.msra.gmra.mrb[0].mxu1 %vm69_vm1, %v610_v5  ;;  %574 = vmatprep.subr.bf16.mxu0 %v713_v0  ;;  %p685_p13 = por %p684_p12, %p683_p11 }
  0x3e   :  { %557 = vmatpush3.bf16.msra.mxu1 %v118_v7  ;;  %558 = vmatprep.mubr.msk.bf16.mxu1 %vm714_vm0, %v713_v0 }
  0x3f   :  { %568 = vmatprep.subr.bf16.mxu1 %v713_v0  ;;  %565 = vmatmul.mubr.msk.bf16.vlgmr.msra.gmra.mrb[0].mxu0 %vm69_vm1, %v610_v5  ;;  %p686_p0 = pnand %p685_p13, %p679_p10 }
  0x40   :  { %575 = vmatpush3.bf16.msra.mxu0 %v256_v13  ;;  %576 = vmatprep.mubr.msk.bf16.mxu0 %vm714_vm0, %v713_v0 }
  0x41   :  { %586 = vmatprep.subr.bf16.mxu0 %v611_v20 }
  0x45   :  { %559 = vmatmul.mubr.msk.bf16.vlgmr.msra.gmra.mrb[4].mxu1 %vm69_vm1, %v610_v5 }
  0x46   :  { %569 = vmatpush3.bf16.msra.mxu1 %v210_v16  ;;  %570 = vmatprep.mubr.msk.bf16.mxu1 %vm714_vm0, %v713_v0 }
  0x47   :  { %580 = vmatprep.subr.bf16.mxu1 %v713_v0  ;;  %577 = vmatmul.mubr.msk.bf16.vlgmr.msra.gmra.mrb[4].mxu0 %vm69_vm1, %v610_v5 }
  0x48   :  { %587 = vmatpush3.bf16.msra.mxu0 %v611_v20 }
  0x4d   :  { %571 = vmatmul.mubr.msk.bf16.vlgmr.msra.gmra.mrb[8].mxu1 %vm69_vm1, %v610_v5 }
  0x4e   :  { %581 = vmatpush3.bf16.msra.mxu1 %v302_v19  ;;  %582 = vmatprep.mubr.msk.bf16.mxu1 %vm714_vm0, %v713_v0 }
  0x55   :  { %583 = vmatmul.mubr.msk.bf16.vlgmr.msra.gmra.mrb[12].mxu1 %vm69_vm1, %v610_v5 }
 0x110   :  { %v107_v21 = vpop.f32.mrb[0].mxu1 }
 0x111   :  { %v554_v22 = vpop.f32.mrb[1].mxu1 }
 0x112   :  { %v110_v23 = vpop.f32.mrb[2].mxu1  ;;  %v199_v26 = vpop.f32.mrb[0].mxu0 }
 0x113   :  { %v114_v24 = vpack.c.bf16 %v110_v23, %v107_v21  ;;  %v555_v25 = vpop.f32.mrb[3].mxu1  ;;  %v566_v27 = vpop.f32.mrb[1].mxu0 }
 0x114   :  { %v202_v28 = vpop.f32.mrb[2].mxu0 }
 0x115   :  { %588 = vmatprep.mubr.msk.bf16.mxu0 %vm69_vm1, %v114_v24  ;;  %v206_v29 = vpack.c.bf16 %v202_v28, %v199_v26  ;;  %v567_v30 = vpop.f32.mrb[3].mxu0 }
 0x118   :  { %v153_v31 = vpop.f32.mrb[4].mxu1 }
 0x119   :  { %v560_v32 = vpop.f32.mrb[5].mxu1 }
 0x11a   :  { %v156_v33 = vpop.f32.mrb[6].mxu1  ;;  %v291_v36 = vpop.f32.mrb[4].mxu0 }
 0x11b   :  { %v160_v34 = vpack.c.bf16 %v156_v33, %v153_v31  ;;  %v561_v35 = vpop.f32.mrb[7].mxu1  ;;  %v578_v37 = vpop.f32.mrb[5].mxu0 }
 0x11c   :  { %v294_v38 = vpop.f32.mrb[6].mxu0 }
 0x11d   :  { %589 = vmatmul.mubr.msk.bf16.vlgmr.msra.gmra.mrb[8].mxu0 %vm69_vm1, %v160_v34  ;;  %v298_v39 = vpack.c.bf16 %v294_v38, %v291_v36  ;;  %v579_v40 = vpop.f32.mrb[7].mxu0 }
 0x11e   :  { %592 = vmatprep.mubr.msk.bf16.mxu0 %vm69_vm1, %v206_v29 }
 0x120   :  { %v245_v41 = vpop.f32.mrb[8].mxu1 }
 0x121   :  { %v572_v42 = vpop.f32.mrb[9].mxu1 }
 0x122   :  { %v248_v43 = vpop.f32.mrb[10].mxu1 }
 0x123   :  { %v252_v44 = vpack.c.bf16 %v248_v43, %v245_v41  ;;  %v573_v45 = vpop.f32.mrb[11].mxu1 }
 0x125   :  { %593 = vmatmul.mubr.msk.bf16.gmra.mrb[12].mxu0 %vm69_vm1, %v252_v44 }
 0x126   :  { %596 = vmatprep.mubr.msk.bf16.mxu0 %vm69_vm1, %v298_v39 }
 0x128   :  { %v337_v46 = vpop.f32.mrb[12].mxu1 }
 0x129   :  { %v584_v47 = vpop.f32.mrb[13].mxu1 }
 0x12a   :  { %v340_v48 = vpop.f32.mrb[14].mxu1 }
 0x12b   :  { %v344_v49 = vpack.c.bf16 %v340_v48, %v337_v46  ;;  %v585_v50 = vpop.f32.mrb[15].mxu1 }
 0x12d   :  { %597 = vmatmul.mubr.msk.bf16.gmra.mrb[16].mxu0 %vm69_vm1, %v344_v49 }
 0x1f0   :  { %v590_v51 = vpop.f32.mrb[8].mxu0 }
 0x1f1   :  { %v464_v52 = vsub.f32 %v790_v4, %v590_v51  ;;  %476 = vst.msk [vmem:[#allocation8 + $0x10] sm:$0xff] %vm69_vm1, %v590_v51  ;;  %v403_v53 = vpop.f32.mrb[9].mxu0 }
 0x1f2   :  { %v462_v54 = vsub.f32 %v784_v1, %v403_v53  ;;  %474 = vst.msk [vmem:[#allocation8] sm:$0xff] %vm69_vm1, %v403_v53  ;;  %v591_v55 = vpop.f32.mrb[10].mxu0 }
 0x1f3   :  { %489 = vst.msk [vmem:[#allocation8 + $0x40] sm:$0xff] %vm69_vm1, %v464_v52  ;;  %v465_v56 = vsub.f32 %v792_v6, %v591_v55  ;;  %477 = vst.msk [vmem:[#allocation8 + $0x18] sm:$0xff] %vm69_vm1, %v591_v55  ;;  %v406_v57 = vpop.f32.mrb[11].mxu0 }
 0x1f4   :  { %487 = vst.msk [vmem:[#allocation8 + $0x30] sm:$0xff] %vm69_vm1, %v462_v54  ;;  %v463_v58 = vsub.f32 %v786_v2, %v406_v57  ;;  %475 = vst.msk [vmem:[#allocation8 + $0x8] sm:$0xff] %vm69_vm1, %v406_v57 }
 0x1f5   :  { %490 = vst.msk [vmem:[#allocation8 + $0x48] sm:$0xff] %vm69_vm1, %v465_v56 }
 0x1f6   :  { %488 = vst.msk [vmem:[#allocation8 + $0x38] sm:$0xff] %vm69_vm1, %v463_v58 }
 0x1f8   :  { %v594_v59 = vpop.f32.mrb[12].mxu0 }
 0x1f9   :  { %v468_v60 = vsub.f32 %v810_v14, %v594_v59  ;;  %480 = vst.msk [vmem:[#allocation8 + $0x60] sm:$0xff] %vm69_vm1, %v594_v59  ;;  %v419_v61 = vpop.f32.mrb[13].mxu0 }
 0x1fa   :  { %v466_v62 = vsub.f32 %v796_v8, %v419_v61  ;;  %478 = vst.msk [vmem:[#allocation8 + $0x20] sm:$0xff] %vm69_vm1, %v419_v61  ;;  %v595_v63 = vpop.f32.mrb[14].mxu0 }
 0x1fb   :  { %493 = vst.msk [vmem:[#allocation8 + $0x90] sm:$0xff] %vm69_vm1, %v468_v60  ;;  %v469_v0 = vsub.f32 %v812_v15, %v595_v63  ;;  %481 = vst.msk [vmem:[#allocation8 + $0x68] sm:$0xff] %vm69_vm1, %v595_v63  ;;  %v422_v1 = vpop.f32.mrb[15].mxu0 }
 0x1fc   :  { %491 = vst.msk [vmem:[#allocation8 + $0x50] sm:$0xff] %vm69_vm1, %v466_v62  ;;  %v467_v2 = vsub.f32 %v798_v9, %v422_v1  ;;  %479 = vst.msk [vmem:[#allocation8 + $0x28] sm:$0xff] %vm69_vm1, %v422_v1 }
 0x1fd   :  { %494 = vst.msk [vmem:[#allocation8 + $0x98] sm:$0xff] %vm69_vm1, %v469_v0 }
 0x1fe   :  { %492 = vst.msk [vmem:[#allocation8 + $0x58] sm:$0xff] %vm69_vm1, %v467_v2 }
 0x200   :  { %v598_v3 = vpop.f32.mrb[16].mxu0 }
 0x201   :  { %v472_v4 = vsub.f32 %v820_v17, %v598_v3  ;;  %484 = vst.msk [vmem:[#allocation8 + $0x80] sm:$0xff] %vm69_vm1, %v598_v3  ;;  %v435_v5 = vpop.f32.mrb[17].mxu0 }
 0x202   :  { %v470_v6 = vsub.f32 %v800_v10, %v435_v5  ;;  %482 = vst.msk [vmem:[#allocation8 + $0x70] sm:$0xff] %vm69_vm1, %v435_v5  ;;  %v599_v7 = vpop.f32.mrb[18].mxu0 }
 0x203   :  { %497 = vst.msk [vmem:[#allocation8 + $0xb0] sm:$0xff] %vm69_vm1, %v472_v4  ;;  %v473_v8 = vsub.f32 %v822_v18, %v599_v7  ;;  %485 = vst.msk [vmem:[#allocation8 + $0x88] sm:$0xff] %vm69_vm1, %v599_v7  ;;  %v438_v9 = vpop.f32.mrb[19].mxu0 }
 0x204   :  { %495 = vst.msk [vmem:[#allocation8 + $0xa0] sm:$0xff] %vm69_vm1, %v470_v6  ;;  %v471_v11 = vsub.f32 %v804_v12, %v438_v9  ;;  %483 = vst.msk [vmem:[#allocation8 + $0x78] sm:$0xff] %vm69_vm1, %v438_v9 }
 0x205   :  { %498 = vst.msk [vmem:[#allocation8 + $0xb8] sm:$0xff] %vm69_vm1, %v473_v8 }
 0x206   :  { %496 = vst.msk [vmem:[#allocation8 + $0xa8] sm:$0xff] %vm69_vm1, %v471_v11 }
 0x207   :  { %689 = shalt.err (!%p686_p0)
}
 0x208   :  { %s690_s27 = scalar_lea.hbm %s890_s3, 3072 }
 0x209   :  { %p691_p1 = scmp.ne.s32.totalorder %s890_s3, %s690_s27  ;;  %p694_p2 = scmp.lt.u32.totalorder %s690_s27, %s890_s3 }
 0x20b   :  { %p696_p3 = pnand %p694_p2, %p691_p1 }
 0x20d   :  { %699 = shalt.err (!%p696_p3)
}
 0x20e   :  { %510 = dma.vmem_to_hbm [thread:$0]  %s505_s23, 3072, %s890_s3, [#allocation4], %s711_s0, %s711_s0, %s712_s15  }
 0x20f   :  { %704 = dma.done.wait [#allocation4], 3072  }
 0x210   :  { %705 = vsyncadd [#allocation4], 4294964224 }
 0x211   :  { %514 = vsyncpa [#allocation3], 1 }
 0x212   :  { %515 = vsyncpa [#allocation6], 1 }
 0x213   :  { %516 = vsyncpa [#allocation4], 1 }

</bundles_post_ra>
